<compile_context>
chip_gen: v7x
topology: tpu7x:2x2x1
jax: 0.10.0
libtpu: 0.0.40
codegen_flags: <defaults>
</compile_context>

<pallas_src>
import math

import jax
import jax.numpy as jnp
from jax.experimental import pallas as pl
from jax.experimental.pallas import tpu as pltpu

EPS = 1e-6


def _charbonnier_kernel(x_ref, y_ref, out_ref):
    """Accumulate partial sums of sqrt((x-y)^2 + eps) into a vreg-shaped block.

    out_ref is an (8, cols) f32 block that stays resident across the reduction
    (second) grid axis and acts as a per-parallel-slice accumulator.
    """
    @pl.when(pl.program_id(1) == 0)
    def _init():
        out_ref[...] = jnp.zeros_like(out_ref)

    diff = x_ref[...].astype(jnp.float32) - y_ref[...].astype(jnp.float32)
    err = jnp.sqrt(diff * diff + jnp.float32(EPS))
    r, c = err.shape  # static block shape (row_tile, cols)
    if r == 8:
        part = err
    else:
        # (row_tile, cols) -> (row_tile//8, 8, cols) is a tile-aligned split of
        # the sublane axis (no relayout); the axis-0 sum lowers to vreg adds.
        part = err.reshape(r // 8, 8, c).sum(axis=0)
    out_ref[...] += part


def _round_up(v, m):
    return -(-v // m) * m


def generator_loss(out_images, target_images, *, cols=1024, max_row_tile=512,
                   num_partials=2):
    """GeneratorLoss.forward: Charbonnier loss over two same-shape tensors."""
    assert out_images.shape == target_images.shape, (
        out_images.shape, target_images.shape)

    total = math.prod(out_images.shape)
    itemsize = jnp.dtype(out_images.dtype).itemsize
    sub_align = {4: 8, 2: 16, 1: 32}.get(itemsize, 8)  # sublane packing

    # Lane-dense slab: last dim = cols (large multiple of 128).
    rows = _round_up(pl.cdiv(total, cols), sub_align)

    # Split across TensorCores only when there is enough work per core.
    n_par = num_partials if rows >= num_partials * max_row_tile else 1

    # Pick the biggest row tile (multiple of sub_align, <= max_row_tile) that
    # divides the row count for this split; otherwise keep the max tile and
    # pad (padding is better than tiny overhead-bound tiles).
    row_tile = min(max_row_tile, rows)
    if rows % (n_par * row_tile) != 0:
        for rt in range(row_tile - sub_align, 127, -sub_align):
            if rows % (n_par * rt) == 0:
                row_tile = rt
                break
    chunk = n_par * row_tile
    padded_rows = _round_up(rows, chunk)
    n_steps = padded_rows // chunk
    pad = padded_rows * cols - total  # zero-padded elements

    xf = out_images.reshape(-1)
    yf = target_images.reshape(-1)
    if pad:
        xf = jnp.pad(xf, (0, pad))
        yf = jnp.pad(yf, (0, pad))
    x2 = xf.reshape(padded_rows, cols)
    y2 = yf.reshape(padded_rows, cols)

    in_block = pl.BlockSpec((row_tile, cols), lambda p, s: (p * n_steps + s, 0))
    partials = pl.pallas_call(
        _charbonnier_kernel,
        out_shape=jax.ShapeDtypeStruct((n_par * 8, cols), jnp.float32),
        grid_spec=pltpu.PrefetchScalarGridSpec(
            num_scalar_prefetch=0,
            grid=(n_par, n_steps),
            in_specs=[in_block, in_block],
            out_specs=pl.BlockSpec((8, cols), lambda p, s: (p, 0)),
        ),
        compiler_params=pltpu.CompilerParams(
            dimension_semantics=("parallel", "arbitrary"),
            vmem_limit_bytes=32 * 1024 * 1024,
        ),
        cost_estimate=pl.CostEstimate(
            flops=3 * padded_rows * cols,
            transcendentals=padded_rows * cols,
            bytes_accessed=2 * padded_rows * cols * itemsize
            + n_par * 8 * cols * 4,
        ),
    )(x2, y2)

    # Single tiny reduce + exact removal of the zero-padding contribution
    # (each padded element adds exactly sqrt(0 + eps)).
    total_sum = jnp.sum(partials, dtype=jnp.float32)
    pad_term = jnp.float32(pad) * jnp.sqrt(jnp.float32(EPS))
    return (total_sum - pad_term) / jnp.float32(total)


def generator_loss_ref(out_images, target_images):
    diff = out_images.astype(jnp.float32) - target_images.astype(jnp.float32)
    return jnp.mean(jnp.sqrt(diff * diff + jnp.float32(EPS)))


if __name__ == "__main__":
    key = jax.random.PRNGKey(0)
    k1, k2 = jax.random.split(key)
    # Small NCHW shapes consistent with the module's image-loss usage.
    x = jax.random.normal(k1, (2, 4, 16, 16), dtype=jnp.float32)
    y = jax.random.normal(k2, (2, 4, 16, 16), dtype=jnp.float32)

    loss_fn = jax.jit(generator_loss)
    loss = jax.block_until_ready(loss_fn(x, y))
    ref = jax.block_until_ready(generator_loss_ref(x, y))
    assert jnp.allclose(loss, ref, rtol=1e-5, atol=1e-5), (loss, ref)

    print("KERNEL_OK")
</pallas_src>

<mosaic_0001>
module attributes {stable_mosaic.version = 11 : i64} {
  func.func @_charbonnier_kernel(%arg0: i32, %arg1: i32, %arg2: memref<8x1024xf32, #tpu.memory_space<vmem>>, %arg3: memref<8x1024xf32, #tpu.memory_space<vmem>>, %arg4: memref<8x1024xf32, #tpu.memory_space<vmem>>) attributes {dimension_semantics = [#tpu.dimension_semantics<parallel>, #tpu.dimension_semantics<arbitrary>], iteration_bounds = array<i64: 1, 1>, scalar_prefetch = 0 : i64, scratch_operands = 0 : i64, tpu.core_type = #tpu.core_type<tc>, window_params = [{transform_indices = @transform_0, window_bounds = array<i64: 8, 1024>}, {transform_indices = @transform_1, window_bounds = array<i64: 8, 1024>}, {transform_indices = @transform_2, window_bounds = array<i64: 8, 1024>}]} {
    %c0_i32 = arith.constant 0 : i32
    %0 = arith.cmpi eq, %arg1, %c0_i32 : i32
    %1 = arith.extui %0 : i1 to i32
    %c0_i32_0 = arith.constant 0 : i32
    %2 = arith.cmpi ne, %1, %c0_i32_0 : i32
    scf.if %2 {
      %cst_8 = arith.constant 0.000000e+00 : f32
      %13 = vector.broadcast %cst_8 : f32 to vector<8x1024xf32>
      %c0_9 = arith.constant 0 : index
      %c0_10 = arith.constant 0 : index
      %14 = vector.load %arg4[%c0_9, %c0_10] : memref<8x1024xf32, #tpu.memory_space<vmem>>, vector<8x1024xf32>
      tpu.vector_store %arg4[%c0_9, %c0_10], %13 {strides = array<i32>} : memref<8x1024xf32, #tpu.memory_space<vmem>>, vector<8x1024xf32>,
    } else {
    }
    %c0 = arith.constant 0 : index
    %c0_1 = arith.constant 0 : index
    %3 = vector.load %arg2[%c0, %c0_1] : memref<8x1024xf32, #tpu.memory_space<vmem>>, vector<8x1024xf32>
    %c0_2 = arith.constant 0 : index
    %c0_3 = arith.constant 0 : index
    %4 = vector.load %arg3[%c0_2, %c0_3] : memref<8x1024xf32, #tpu.memory_space<vmem>>, vector<8x1024xf32>
    %5 = arith.subf %3, %4 : vector<8x1024xf32>
    %6 = arith.mulf %5, %5 : vector<8x1024xf32>
    %cst = arith.constant 9.99999997E-7 : f32
    %7 = vector.broadcast %cst : f32 to vector<8x1024xf32>
    %8 = arith.addf %6, %7 : vector<8x1024xf32>
    %9 = math.sqrt %8 : vector<8x1024xf32>
    %c0_4 = arith.constant 0 : index
    %c0_5 = arith.constant 0 : index
    %10 = vector.load %arg4[%c0_4, %c0_5] : memref<8x1024xf32, #tpu.memory_space<vmem>>, vector<8x1024xf32>
    %11 = arith.addf %10, %9 : vector<8x1024xf32>
    %c0_6 = arith.constant 0 : index
    %c0_7 = arith.constant 0 : index
    %12 = vector.load %arg4[%c0_6, %c0_7] : memref<8x1024xf32, #tpu.memory_space<vmem>>, vector<8x1024xf32>
    tpu.vector_store %arg4[%c0_6, %c0_7], %11 {strides = array<i32>} : memref<8x1024xf32, #tpu.memory_space<vmem>>, vector<8x1024xf32>,
    return
  }
  func.func @transform_0(%arg0: i32, %arg1: i32) -> (i32, i32) {
    %c1_i32 = arith.constant 1 : i32
    %0 = arith.muli %arg0, %c1_i32 : i32
    %1 = arith.addi %0, %arg1 : i32
    %c0_i32 = arith.constant 0 : i32
    %c0_i32_0 = arith.constant 0 : i32
    return %1, %c0_i32 : i32, i32
  }
  func.func @transform_1(%arg0: i32, %arg1: i32) -> (i32, i32) {
    %c1_i32 = arith.constant 1 : i32
    %0 = arith.muli %arg0, %c1_i32 : i32
    %1 = arith.addi %0, %arg1 : i32
    %c0_i32 = arith.constant 0 : i32
    %c0_i32_0 = arith.constant 0 : i32
    return %1, %c0_i32 : i32, i32
  }
  func.func @transform_2(%arg0: i32, %arg1: i32) -> (i32, i32) {
    %c0_i32 = arith.constant 0 : i32
    %c0_i32_0 = arith.constant 0 : i32
    return %arg0, %c0_i32 : i32, i32
  }
}

</mosaic_0001>

<bundles_post_ra>
// kernel: generator_loss.1
= control target key start
LH: loop header
LB: loop body
LE: loop exit
PB: predicated region body
PF: predicated region fallthrough
CT: control target
= control target key end

     0   :  { %s321_s0 = inlined_call_operand.vmem [shape: f32[8,1024], index: 0, kind: input, shape index: {}]   ;;  %s322_s1 = inlined_call_operand.vmem [shape: f32[8,1024], index: 1, kind: input, shape index: {}]   ;;  %s323_s2 = inlined_call_operand.vmem [shape: f32[8,1024], index: 2, kind: output, shape index: {}]  }
   0x1   :  { %v63_v0 = vld [vmem:[%s321_s0] sm:$0xff]  ;;  %v64_v2 = vld [vmem:[%s321_s0 + $0x8] sm:$0xff]  ;;  %v65_v5 = vld [vmem:[%s321_s0 + $0x10] sm:$0xff] }
   0x2   :  { %v71_v1 = vld [vmem:[%s322_s1] sm:$0xff]  ;;  %v72_v4 = vld [vmem:[%s322_s1 + $0x8] sm:$0xff]  ;;  %v73_v6 = vld [vmem:[%s322_s1 + $0x10] sm:$0xff] }
   0x3   :  { %v79_v3 = vsub.f32 %v63_v0, %v71_v1  ;;  %v80_v7 = vsub.f32 %v64_v2, %v72_v4  ;;  %v81_v8 = vsub.f32 %v65_v5, %v73_v6  ;;  %v66_v9 = vld [vmem:[%s321_s0 + $0x18] sm:$0xff]  ;;  %v67_v11 = vld [vmem:[%s321_s0 + $0x20] sm:$0xff]  ;;  %v68_v15 = vld [vmem:[%s321_s0 + $0x28] sm:$0xff] }
   0x4   :  { %v74_v10 = vld [vmem:[%s322_s1 + $0x18] sm:$0xff]  ;;  %v75_v14 = vld [vmem:[%s322_s1 + $0x20] sm:$0xff]  ;;  %v76_v16 = vld [vmem:[%s322_s1 + $0x28] sm:$0xff] }
   0x5   :  { %v87_v12 = vmul.f32 %v79_v3, %v79_v3  ;;  %v82_v13 = vsub.f32 %v66_v9, %v74_v10  ;;  %v88_v17 = vmul.f32 %v80_v7, %v80_v7  ;;  %v89_v18 = vmul.f32 %v81_v8, %v81_v8  ;;  %v69_v21 = vld [vmem:[%s321_s0 + $0x30] sm:$0xff]  ;;  %v70_v30 = vld [vmem:[%s321_s0 + $0x38] sm:$0xff] }
   0x6   :  { %v83_v19 = vsub.f32 %v67_v11, %v75_v14  ;;  %v84_v20 = vsub.f32 %v68_v15, %v76_v16  ;;  %v77_v22 = vld [vmem:[%s322_s1 + $0x30] sm:$0xff]  ;;  %v78_v31 = vld [vmem:[%s322_s1 + $0x38] sm:$0xff] }
   0x7   :  { %v95_v23 = vadd.f32 1e-06, %v87_v12  ;;  %v90_v24 = vmul.f32 %v82_v13, %v82_v13  ;;  %v96_v25 = vadd.f32 1e-06, %v88_v17  ;;  %v97_v26 = vadd.f32 1e-06, %v89_v18 }
   0x8   :  { %v91_v27 = vmul.f32 %v83_v19, %v83_v19  ;;  %v92_v28 = vmul.f32 %v84_v20, %v84_v20  ;;  %v85_v29 = vsub.f32 %v69_v21, %v77_v22  ;;  %v86_v36 = vsub.f32 %v70_v30, %v78_v31 }
   0x9   :  { %200 = vrsqrt.f32 %v95_v23  ;;  %v98_v32 = vadd.f32 1e-06, %v90_v24  ;;  %vm105_vm0 = vcmp.eq.f32.partialorder %v95_v23, inf  ;;  %vm107_vm1 = vcmp.eq.f32.partialorder %v95_v23, 0.0 }
   0xa   :  { %202 = vrsqrt.f32 %v96_v25  ;;  %v99_v33 = vadd.f32 1e-06, %v91_v27  ;;  %v100_v34 = vadd.f32 1e-06, %v92_v28  ;;  %v93_v35 = vmul.f32 %v85_v29, %v85_v29 }
   0xb   :  { %204 = vrsqrt.f32 %v97_v26  ;;  %v94_v38 = vmul.f32 %v86_v36, %v86_v36  ;;  %v108_v40 = vand.u32 2147483648, %v95_v23  ;;  %vm112_vm2 = vcmp.eq.f32.partialorder %v96_v25, inf }
   0xc   :  { %206 = vrsqrt.f32 %v98_v32  ;;  %v279_v37 = vadd.f32 1e-06, %v93_v35  ;;  %vm114_vm3 = vcmp.eq.f32.partialorder %v96_v25, 0.0  ;;  %v115_v43 = vand.u32 2147483648, %v96_v25 }
   0xd   :  { %208 = vrsqrt.f32 %v99_v33  ;;  %vm119_vm4 = vcmp.eq.f32.partialorder %v97_v26, inf  ;;  %v102_v44 = vadd.f32 1e-06, %v94_v38  ;;  %vm121_vm5 = vcmp.eq.f32.partialorder %v97_v26, 0.0 }
   0xe   :  { %210 = vrsqrt.f32 %v100_v34  ;;  %v122_v47 = vand.u32 2147483648, %v97_v26  ;;  %vm126_vm6 = vcmp.eq.f32.partialorder %v98_v32, inf  ;;  %vm128_vm7 = vcmp.eq.f32.partialorder %v98_v32, 0.0 }
   0xf   :  { %212 = vrsqrt.f32 %v279_v37  ;;  %v129_v52 = vand.u32 2147483648, %v98_v32  ;;  %vm133_vm8 = vcmp.eq.f32.partialorder %v99_v33, inf  ;;  %vm135_vm9 = vcmp.eq.f32.partialorder %v99_v33, 0.0 }
  0x10   :  { %214 = vrsqrt.f32 %v102_v44  ;;  %v136_v59 = vand.u32 2147483648, %v99_v33  ;;  %vm140_vm10 = vcmp.eq.f32.partialorder %v100_v34, inf  ;;  %v143_v62 = vand.u32 2147483648, %v100_v34 }
  0x11   :  { %vm142_vm11 = vcmp.eq.f32.partialorder %v100_v34, 0.0  ;;  %vm147_vm12 = vcmp.eq.f32.partialorder %v279_v37, inf  ;;  %v150_v6 = vand.u32 2147483648, %v279_v37  ;;  %vm149_vm13 = vcmp.eq.f32.partialorder %v279_v37, 0.0 }
  0x12   :  { %vm154_vm14 = vcmp.eq.f32.partialorder %v102_v44, inf  ;;  %v157_v11 = vand.u32 2147483648, %v102_v44  ;;  %vm156_vm15 = vcmp.eq.f32.partialorder %v102_v44, 0.0 }
  0x13   :  { %v201_v39 = vpop.eup %200 }
  0x14   :  { %v203_v41 = vpop.eup %202  ;;  %v104_v42 = vmul.f32 %v201_v39, %v95_v23 }
  0x15   :  { %v205_v45 = vpop.eup %204  ;;  %v111_v46 = vmul.f32 %v203_v41, %v96_v25 }
  0x16   :  { %v106_v48 = vsel %vm105_vm0, %v95_v23, %v104_v42  ;;  %v118_v49 = vmul.f32 %v205_v45, %v97_v26  ;;  %v207_v53 = vpop.eup %206 }
  0x17   :  { %v109_v50 = vsel %vm107_vm1, %v108_v40, %v106_v48  ;;  %v113_v51 = vsel %vm112_vm2, %v96_v25, %v111_v46  ;;  %v209_v56 = vpop.eup %208  ;;  %v125_v58 = vmul.f32 %v207_v53, %v98_v32 }
  0x18   :  { %v116_v54 = vsel %vm114_vm3, %v115_v43, %v113_v51  ;;  %v120_v55 = vsel %vm119_vm4, %v97_v26, %v118_v49  ;;  %v211_v60 = vpop.eup %210  ;;  %175 = vst [vmem:[%s323_s2] sm:$0xff] %v109_v50  ;;  %v132_v61 = vmul.f32 %v209_v56, %v99_v33 }
  0x19   :  { %v123_v57 = vsel %vm121_vm5, %v122_v47, %v120_v55  ;;  %176 = vst [vmem:[%s323_s2 + $0x8] sm:$0xff] %v116_v54  ;;  %v127_v63 = vsel %vm126_vm6, %v98_v32, %v125_v58  ;;  %v139_v0 = vmul.f32 %v211_v60, %v100_v34  ;;  %v213_v3 = vpop.eup %212 }
  0x1a   :  { %177 = vst [vmem:[%s323_s2 + $0x10] sm:$0xff] %v123_v57  ;;  %v130_v1 = vsel %vm128_vm7, %v129_v52, %v127_v63  ;;  %v134_v2 = vsel %vm133_vm8, %v99_v33, %v132_v61  ;;  %v146_v8 = vmul.f32 %v213_v3, %v279_v37  ;;  %v215_v9 = vpop.eup %214 }
  0x1b   :  { %v137_v4 = vsel %vm135_vm9, %v136_v59, %v134_v2  ;;  %v141_v5 = vsel %vm140_vm10, %v100_v34, %v139_v0  ;;  %178 = vst [vmem:[%s323_s2 + $0x18] sm:$0xff] %v130_v1  ;;  %v153_v13 = vmul.f32 %v215_v9, %v102_v44 }
  0x1c   :  { %v144_v7 = vsel %vm142_vm11, %v143_v62, %v141_v5  ;;  %179 = vst [vmem:[%s323_s2 + $0x20] sm:$0xff] %v137_v4  ;;  %v148_v10 = vsel %vm147_vm12, %v279_v37, %v146_v8 }
  0x1d   :  { %180 = vst [vmem:[%s323_s2 + $0x28] sm:$0xff] %v144_v7  ;;  %v151_v12 = vsel %vm149_vm13, %v150_v6, %v148_v10  ;;  %v155_v14 = vsel %vm154_vm14, %v102_v44, %v153_v13 }
  0x1e   :  { %181 = vst [vmem:[%s323_s2 + $0x30] sm:$0xff] %v151_v12  ;;  %v158_v15 = vsel %vm156_vm15, %v157_v11, %v155_v14 }
  0x1f   :  { %182 = vst [vmem:[%s323_s2 + $0x38] sm:$0xff] %v158_v15 }

</bundles_post_ra>
